<compile_context>
chip_gen: v5e
topology: v5e:2x2
jax: 0.10.0
libtpu: 0.0.40
codegen_flags: <defaults>
</compile_context>

<pallas_src>
import functools

import jax
import jax.numpy as jnp
from jax.experimental import pallas as pl
from jax.experimental.pallas import tpu as pltpu


D_IN, D_H, D_OUT = 100, 256, 784
D_IN_PAD = 128           # lane-aligned K for layer 1 (exactly fills a 128-deep MXU pass)


def _round_up(x, m):
    return (x + m - 1) // m * m


def _bf16_vector_units():
    """True on chips with native bf16 VPU/EUP (v6e and later); False on v5e/v5p/v4/older."""
    try:
        kind = jax.devices()[0].device_kind.lower()
    except Exception:
        return False
    return not any(s in kind for s in ("v2", "v3", "v4", "v5"))


def gan_kernel(x_ref, w1_ref, b1_ref, w2_ref, b2_ref, w3_ref, b3_ref, o_ref,
               *, bf16_tanh):
    """Fused 3-layer MLP: tanh(relu(relu(x@W1+b1)@W2+b2)@W3+b3).

    Matmul operands are bf16 (MXU-native); accumulation, bias-add and ReLU are
    f32. The final tanh runs in bf16 on v6e/v7x, f32 on v5e; store is bf16.
    """
    x = x_ref[...]                                                     # (tb, 128) bf16
    h1 = jnp.dot(x, w1_ref[...], preferred_element_type=jnp.float32)   # (tb, 256) f32
    h1 = jnp.maximum(h1 + b1_ref[...], 0.0)
    h2 = jnp.dot(h1.astype(jnp.bfloat16), w2_ref[...],
                 preferred_element_type=jnp.float32)                   # (tb, 256) f32
    h2 = jnp.maximum(h2 + b2_ref[...], 0.0)
    h3 = jnp.dot(h2.astype(jnp.bfloat16), w3_ref[...],
                 preferred_element_type=jnp.float32)                   # (tb, 784) f32
    z = h3 + b3_ref[...]
    if bf16_tanh:
        o_ref[...] = jnp.tanh(z.astype(jnp.bfloat16))                  # bf16 EUP (v6e+)
    else:
        o_ref[...] = jnp.tanh(z).astype(jnp.bfloat16)                  # f32 EUP (v5e)


def prepare_params(params):
    """One-time weight prep: bf16 cast + lane padding for layer-1 K. Reuse across calls."""
    w1, b1, w2, b2, w3, b3 = params
    w1_p = jnp.pad(w1.astype(jnp.bfloat16), ((0, D_IN_PAD - D_IN), (0, 0)))  # (128, 256)
    w2_p = w2.astype(jnp.bfloat16)                                            # (256, 256)
    w3_p = w3.astype(jnp.bfloat16)                                            # (256, 784)
    return (w1_p, b1.astype(jnp.float32), w2_p, b2.astype(jnp.float32),
            w3_p, b3.astype(jnp.float32))


def generative_gan_forward(x, prepared_params, *, tb=None):
    """x: (B, 100) float32. Returns (B, 784) bfloat16."""
    w1_p, b1_p, w2_p, b2_p, w3_p, b3_p = prepared_params
    B = x.shape[0]
    B8 = _round_up(B, 8)          # pad batch only to the sublane multiple

    # Batch tile: at least 2 grid steps (v7x megacore + active DMA pipeline),
    # ~512-row tiles for big batches, 1024 for very big ones.
    if tb is None:
        target = 1024 if B8 >= 2048 else 512
        n_steps = max(2, pl.cdiv(B8, target))
        tb = _round_up(pl.cdiv(B8, n_steps), 8)
    tb = max(8, _round_up(min(tb, B8), 8))
    grid = (pl.cdiv(B8, tb),)
    B_pad = grid[0] * tb           # wastes at most ~tb-8 rows (tb chosen from B)

    # Lane-aligned, bf16 input (zero padding keeps the math exact).
    x_p = jnp.pad(x.astype(jnp.bfloat16),
                  ((0, B_pad - B), (0, D_IN_PAD - D_IN)))

    full = lambda i: (0, 0)        # weights/biases fully resident for every batch tile
    bf16_tanh = _bf16_vector_units()

    out = pl.pallas_call(
        functools.partial(gan_kernel, bf16_tanh=bf16_tanh),
        out_shape=jax.ShapeDtypeStruct((B_pad, D_OUT), jnp.bfloat16),
        grid_spec=pltpu.PrefetchScalarGridSpec(
            num_scalar_prefetch=0,
            grid=grid,
            in_specs=[
                pl.BlockSpec((tb, D_IN_PAD), lambda i: (i, 0)),   # x tile
                pl.BlockSpec((D_IN_PAD, D_H), full),              # W1 (128, 256)
                pl.BlockSpec((1, D_H), full),                     # b1
                pl.BlockSpec((D_H, D_H), full),                   # W2 (256, 256)
                pl.BlockSpec((1, D_H), full),                     # b2
                pl.BlockSpec((D_H, D_OUT), full),                 # W3 (256, 784) full dims
                pl.BlockSpec((1, D_OUT), full),                   # b3 (1, 784) full dims
            ],
            out_specs=pl.BlockSpec((tb, D_OUT), lambda i: (i, 0)),
        ),
        compiler_params=pltpu.CompilerParams(
            dimension_semantics=("parallel",),     # shard batch tiles across v7x TCs
            vmem_limit_bytes=64 * 1024 * 1024),    # headroom for tb=1024 on v5e
    )(x_p, w1_p, b1_p, w2_p, b2_p, w3_p, b3_p)

    return out if B_pad == B else out[:B]


def init_params(key):
    """Deterministic init mimicking PyTorch nn.Linear default (U[-1/sqrt(fan_in), +])."""
    dims = [(D_IN, D_H), (D_H, D_H), (D_H, D_OUT)]
    params = []
    for (fan_in, fan_out) in dims:
        key, kw, kb = jax.random.split(key, 3)
        bound = 1.0 / jnp.sqrt(fan_in)
        w = jax.random.uniform(kw, (fan_in, fan_out), jnp.float32, -bound, bound)
        b = jax.random.uniform(kb, (1, fan_out), jnp.float32, -bound, bound)
        params += [w, b]
    return tuple(params)


def reference_forward(x, params):
    """Pure-JAX f32 reference matching the PyTorch module semantics."""
    w1, b1, w2, b2, w3, b3 = params
    h1 = jnp.maximum(x @ w1 + b1, 0.0)
    h2 = jnp.maximum(h1 @ w2 + b2, 0.0)
    return jnp.tanh(h2 @ w3 + b3)


if __name__ == "__main__":
    key = jax.random.PRNGKey(0)
    key, kx = jax.random.split(key)
    params = init_params(key)
    prepared = prepare_params(params)     # weight cast/pad hoisted out of the call path

    B = 16
    x = jax.random.normal(kx, (B, D_IN), jnp.float32)   # latent noise vectors

    fwd = jax.jit(generative_gan_forward)
    out = jax.block_until_ready(fwd(x, prepared))

    ref = reference_forward(x, params)
    assert out.shape == (B, D_OUT), out.shape
    # bf16 matmul operands (f32 accumulation) + bf16 tanh/store -> loosened tolerance.
    max_err = float(jnp.max(jnp.abs(out.astype(jnp.float32) - ref)))
    assert max_err < 3e-2, f"mismatch vs JAX reference (max abs err {max_err})"
    print("KERNEL_OK")
</pallas_src>

<mosaic_0001>
module attributes {stable_mosaic.version = 11 : i64} {
  func.func @gan_kernel(%arg0: i32, %arg1: memref<8x128xbf16, #tpu.memory_space<vmem>>, %arg2: memref<128x256xbf16, #tpu.memory_space<vmem>>, %arg3: memref<1x256xf32, #tpu.memory_space<vmem>>, %arg4: memref<256x256xbf16, #tpu.memory_space<vmem>>, %arg5: memref<1x256xf32, #tpu.memory_space<vmem>>, %arg6: memref<256x784xbf16, #tpu.memory_space<vmem>>, %arg7: memref<1x784xf32, #tpu.memory_space<vmem>>, %arg8: memref<8x784xbf16, #tpu.memory_space<vmem>>) attributes {dimension_semantics = [#tpu.dimension_semantics<parallel>], iteration_bounds = array<i64: 2>, scalar_prefetch = 0 : i64, scratch_operands = 0 : i64, tpu.core_type = #tpu.core_type<tc>, window_params = [{transform_indices = @transform_0, window_bounds = array<i64: 8, 128>}, {pipeline_mode = #tpu.pipeline_mode<synchronous>, transform_indices = @transform_1, window_bounds = array<i64: 128, 256>}, {pipeline_mode = #tpu.pipeline_mode<synchronous>, transform_indices = @transform_2, window_bounds = array<i64: 1, 256>}, {pipeline_mode = #tpu.pipeline_mode<synchronous>, transform_indices = @transform_3, window_bounds = array<i64: 256, 256>}, {pipeline_mode = #tpu.pipeline_mode<synchronous>, transform_indices = @transform_4, window_bounds = array<i64: 1, 256>}, {pipeline_mode = #tpu.pipeline_mode<synchronous>, transform_indices = @transform_5, window_bounds = array<i64: 256, 784>}, {pipeline_mode = #tpu.pipeline_mode<synchronous>, transform_indices = @transform_6, window_bounds = array<i64: 1, 784>}, {transform_indices = @transform_7, window_bounds = array<i64: 8, 784>}]} {
    %c0 = arith.constant 0 : index
    %c0_0 = arith.constant 0 : index
    %0 = vector.load %arg1[%c0, %c0_0] : memref<8x128xbf16, #tpu.memory_space<vmem>>, vector<8x128xbf16>
    %c0_1 = arith.constant 0 : index
    %c0_2 = arith.constant 0 : index
    %1 = vector.load %arg2[%c0_1, %c0_2] : memref<128x256xbf16, #tpu.memory_space<vmem>>, vector<128x256xbf16>
    %cst = arith.constant dense<0.000000e+00> : vector<8x256xf32>
    %2 = tpu.matmul %0, %1, %cst {dimension_numbers = #tpu.dot_dimension_numbers<[1], [0], [0], [1], [0, 0, 1, 1], [], []>} : vector<8x128xbf16>, vector<128x256xbf16>, vector<8x256xf32> -> vector<8x256xf32>
    %c0_3 = arith.constant 0 : index
    %c0_4 = arith.constant 0 : index
    %3 = vector.load %arg3[%c0_3, %c0_4] : memref<1x256xf32, #tpu.memory_space<vmem>>, vector<1x256xf32>
    %4 = vector.broadcast %3 : vector<1x256xf32> to vector<8x256xf32>
    %5 = arith.addf %2, %4 : vector<8x256xf32>
    %cst_5 = arith.constant 0.000000e+00 : f32
    %6 = vector.broadcast %cst_5 : f32 to vector<8x256xf32>
    %7 = arith.maximumf %5, %6 : vector<8x256xf32>
    %8 = arith.truncf %7 : vector<8x256xf32> to vector<8x256xbf16>
    %c0_6 = arith.constant 0 : index
    %c0_7 = arith.constant 0 : index
    %9 = vector.load %arg4[%c0_6, %c0_7] : memref<256x256xbf16, #tpu.memory_space<vmem>>, vector<256x256xbf16>
    %cst_8 = arith.constant dense<0.000000e+00> : vector<8x256xf32>
    %10 = tpu.matmul %8, %9, %cst_8 {dimension_numbers = #tpu.dot_dimension_numbers<[1], [0], [0], [1], [0, 0, 1, 1], [], []>} : vector<8x256xbf16>, vector<256x256xbf16>, vector<8x256xf32> -> vector<8x256xf32>
    %c0_9 = arith.constant 0 : index
    %c0_10 = arith.constant 0 : index
    %11 = vector.load %arg5[%c0_9, %c0_10] : memref<1x256xf32, #tpu.memory_space<vmem>>, vector<1x256xf32>
    %12 = vector.broadcast %11 : vector<1x256xf32> to vector<8x256xf32>
    %13 = arith.addf %10, %12 : vector<8x256xf32>
    %cst_11 = arith.constant 0.000000e+00 : f32
    %14 = vector.broadcast %cst_11 : f32 to vector<8x256xf32>
    %15 = arith.maximumf %13, %14 : vector<8x256xf32>
    %16 = arith.truncf %15 : vector<8x256xf32> to vector<8x256xbf16>
    %c0_12 = arith.constant 0 : index
    %c0_13 = arith.constant 0 : index
    %17 = vector.load %arg6[%c0_12, %c0_13] : memref<256x784xbf16, #tpu.memory_space<vmem>>, vector<256x784xbf16>
    %cst_14 = arith.constant dense<0.000000e+00> : vector<8x784xf32>
    %18 = tpu.matmul %16, %17, %cst_14 {dimension_numbers = #tpu.dot_dimension_numbers<[1], [0], [0], [1], [0, 0, 1, 1], [], []>} : vector<8x256xbf16>, vector<256x784xbf16>, vector<8x784xf32> -> vector<8x784xf32>
    %c0_15 = arith.constant 0 : index
    %c0_16 = arith.constant 0 : index
    %19 = vector.load %arg7[%c0_15, %c0_16] : memref<1x784xf32, #tpu.memory_space<vmem>>, vector<1x784xf32>
    %20 = vector.broadcast %19 : vector<1x784xf32> to vector<8x784xf32>
    %21 = arith.addf %18, %20 : vector<8x784xf32>
    %22 = arith.truncf %21 : vector<8x784xf32> to vector<8x784xbf16>
    %23 = math.tanh %22 : vector<8x784xbf16>
    %c0_17 = arith.constant 0 : index
    %c0_18 = arith.constant 0 : index
    %24 = vector.load %arg8[%c0_17, %c0_18] : memref<8x784xbf16, #tpu.memory_space<vmem>>, vector<8x784xbf16>
    tpu.vector_store %arg8[%c0_17, %c0_18], %23 {strides = array<i32>} : memref<8x784xbf16, #tpu.memory_space<vmem>>, vector<8x784xbf16>,
    return
  }
  func.func @transform_0(%arg0: i32) -> (i32, i32) {
    %c0_i32 = arith.constant 0 : i32
    %c0_i32_0 = arith.constant 0 : i32
    return %arg0, %c0_i32 : i32, i32
  }
  func.func @transform_1(%arg0: i32) -> (i32, i32) {
    %c0_i32 = arith.constant 0 : i32
    %c0_i32_0 = arith.constant 0 : i32
    %c0_i32_1 = arith.constant 0 : i32
    return %c0_i32, %c0_i32_0 : i32, i32
  }
  func.func @transform_2(%arg0: i32) -> (i32, i32) {
    %c0_i32 = arith.constant 0 : i32
    %c0_i32_0 = arith.constant 0 : i32
    %c0_i32_1 = arith.constant 0 : i32
    return %c0_i32, %c0_i32_0 : i32, i32
  }
  func.func @transform_3(%arg0: i32) -> (i32, i32) {
    %c0_i32 = arith.constant 0 : i32
    %c0_i32_0 = arith.constant 0 : i32
    %c0_i32_1 = arith.constant 0 : i32
    return %c0_i32, %c0_i32_0 : i32, i32
  }
  func.func @transform_4(%arg0: i32) -> (i32, i32) {
    %c0_i32 = arith.constant 0 : i32
    %c0_i32_0 = arith.constant 0 : i32
    %c0_i32_1 = arith.constant 0 : i32
    return %c0_i32, %c0_i32_0 : i32, i32
  }
  func.func @transform_5(%arg0: i32) -> (i32, i32) {
    %c0_i32 = arith.constant 0 : i32
    %c0_i32_0 = arith.constant 0 : i32
    %c0_i32_1 = arith.constant 0 : i32
    return %c0_i32, %c0_i32_0 : i32, i32
  }
  func.func @transform_6(%arg0: i32) -> (i32, i32) {
    %c0_i32 = arith.constant 0 : i32
    %c0_i32_0 = arith.constant 0 : i32
    %c0_i32_1 = arith.constant 0 : i32
    return %c0_i32, %c0_i32_0 : i32, i32
  }
  func.func @transform_7(%arg0: i32) -> (i32, i32) {
    %c0_i32 = arith.constant 0 : i32
    %c0_i32_0 = arith.constant 0 : i32
    return %arg0, %c0_i32 : i32, i32
  }
}

</mosaic_0001>

<bundles_post_ra>
// kernel: generative_gan_forward.1
= control target key start
LH: loop header
LB: loop body
LE: loop exit
PB: predicated region body
PF: predicated region fallthrough
CT: control target
= control target key end

     0   :  { %12 = vsyncpa [#allocation3], 0  ;;  %s3730_s0 = inlined_call_operand.vmem [shape: bf16[16,128], index: 0, kind: input, shape index: {}]   ;;  %s3731_s1 = inlined_call_operand.vmem [shape: bf16[128,256], index: 1, kind: input, shape index: {}]   ;;  %s3732_s2 = inlined_call_operand.vmem [shape: f32[1,256], index: 2, kind: input, shape index: {}]   ;;  %s3733_s3 = inlined_call_operand.vmem [shape: bf16[256,256], index: 3, kind: input, shape index: {}]   ;;  %s3734_s4 = inlined_call_operand.vmem [shape: f32[1,256], index: 4, kind: input, shape index: {}]   ;;  %s3735_s5 = inlined_call_operand.vmem [shape: bf16[256,784], index: 5, kind: input, shape index: {}]   ;;  %s3736_s6 = inlined_call_operand.vmem [shape: f32[1,784], index: 6, kind: input, shape index: {}]   ;;  %s3737_s7 = inlined_call_operand.hbm [shape: bf16[16,784], index: 7, kind: output, shape index: {}]  }
   0x1   :  { %14 = vsyncpa [#allocation3 + $0x1], 0  ;;  %s2633_s24 = smov 0   ;;  %s2635_s25 = smov 0  }
   0x2   :  { %s2637_s26 = smov 0   ;;  %s2639_s27 = smov 0  }
   0x3 LB: > { %s2654_s28 = sadd.s32 4294967295, %s2591_s27   ;;  %s1666_s29 = sadd.s32 4294967294, %s2591_s27   ;;  %s2591_s27 = sphi %s2639_s27, %s3743_s27   ;;  %s2587_s26 = sphi %s2637_s26, %s3742_s26   ;;  %s2583_s25 = sphi %s2635_s25, %s3741_s25   ;;  %s2579_s24 = sphi %s2633_s24, %s3740_s24  }
   0x4   : > { %s2658_s30 = sadd.s32 1, %s2591_s27   ;;  %s179_s8 = sadd.s32 1, %s2587_s26 }
   0x5   : > { %s176_s9 = ssub.s32 %s2591_s27, %s2658_s30  ;;  %p189_p0 = scmp.ne.s32.totalorder %s2587_s26, %s2583_s25 }
   0x6   : > { %p177_p1 = scmp.eq.s32.totalorder %s176_s9, 0  ;;  %p190_p2 = scmp.eq.s32.totalorder %s2654_s28, 1 }
   0x7   : > { %p195_p3 = scmp.ne.s32.totalorder %s2583_s25, %s2579_s24  ;;  %p196_p4 = scmp.eq.s32.totalorder %s1666_s29, 1 }
   0x8   : > { %s2669_s10 = scalar_select %p177_p1, %s2587_s26, %s179_s8  }
   0x9   : > { %p2671_p5 = por %p190_p2, %p189_p0  ;;  %p2675_p6 = por %p196_p4, %p195_p3 }
   0xa   : > { %p1669_p7 = scmp.ge.s32.totalorder %s2591_s27, 1  ;;  %p239_p8 = scmp.lt.s32.totalorder %s2591_s27, 3 }
   0xc   : > { %p240_p9 = pnand %p1669_p7, %p239_p8 }
   0xd   : > { %p270_p10 = scmp.lt.s32.totalorder (!%p240_p9), %s2654_s28, 1  ;;  %s267_s22 = sand.u32 (!%p240_p9), 1, %s2583_s25  }
   0xe   : > { %243 = sbr.rel (%p240_p9) target bundleno = 541 (0x21d), region = 48  ;;  %s1591_s17 = scalar_lea.sflag (!%p240_p9), [#allocation3], %s267_s22 }
   0xf   : > { %s2474_s29 = smul.u32 (!%p240_p9), 28, %s267_s22  ;;  %s2549_s20 = scalar_lea.hbm (!%p240_p9), %s3737_s7, 56 }
  0x10   : > { %s2475_s9 = smul.u32 (!%p240_p9), 28, %s2654_s28 }
  0x11   : > { %s3687_s8 = scalar_lea.vmem (!%p240_p9), [#allocation2], %s2474_s29 }
  0x12   : > { %s1604_s16 = sshll.u32 (!%p240_p9), %s3687_s8, 4  ;;  %s1605_s16 = int_to_ptr.vmem [resolvable:$true] %s1604_s16 }
  0x13   : > { %v1729_v0 = vld [vmem:[%s3731_s1 + $0x70] sm:$0xf]  ;;  %v2329_v1 = vld [vmem:[%s3731_s1 + $0x74] sm:$0xf0]  ;;  %v2328_v2 = vld [vmem:[%s3731_s1 + $0x74] sm:$0xf] }
  0x14   : > { %v1730_v3 = vor.u32 %v2329_v1, %v1729_v0  ;;  %v1731_v4 = vld [vmem:[%s3731_s1 + $0x78] sm:$0xf0]  ;;  %v1721_v5 = vld [vmem:[%s3731_s1 + $0x60] sm:$0xf]  ;;  %v2327_v6 = vld [vmem:[%s3731_s1 + $0x64] sm:$0xf0] }
  0x15   : > { %v1734_v7 = vor.u32 %v2328_v2, %v1731_v4  ;;  %v2326_v8 = vld [vmem:[%s3731_s1 + $0x64] sm:$0xf]  ;;  %v1723_v9 = vld [vmem:[%s3731_s1 + $0x68] sm:$0xf0]  ;;  %v1722_v10 = vor.u32 %v2327_v6, %v1721_v5  ;;  %v1713_v12 = vld [vmem:[%s3731_s1 + $0x50] sm:$0xf] }
  0x16   : > { %377 = vmatpush.bf16.msra.mxu0 %v1730_v3  ;;  %v1726_v11 = vor.u32 %v2326_v8, %v1723_v9  ;;  %v2325_v13 = vld [vmem:[%s3731_s1 + $0x54] sm:$0xf0]  ;;  %v2324_v14 = vld [vmem:[%s3731_s1 + $0x54] sm:$0xf]  ;;  %v1715_v15 = vld [vmem:[%s3731_s1 + $0x58] sm:$0xf0] }
  0x17   : > { %390 = vmatpush.bf16.msra.mxu1 %v1734_v7  ;;  %v1714_v16 = vor.u32 %v2325_v13, %v1713_v12  ;;  %v1718_v17 = vor.u32 %v2324_v14, %v1715_v15  ;;  %v1705_v18 = vld [vmem:[%s3731_s1 + $0x40] sm:$0xf]  ;;  %v2323_v19 = vld [vmem:[%s3731_s1 + $0x44] sm:$0xf0]  ;;  %v2322_v20 = vld [vmem:[%s3731_s1 + $0x44] sm:$0xf] }
  0x18   : > { %v1707_v21 = vld [vmem:[%s3731_s1 + $0x48] sm:$0xf0]  ;;  %v1706_v22 = vor.u32 %v2323_v19, %v1705_v18  ;;  %v1793_v23 = vld [vmem:[%s3733_s3 + $0x70] sm:$0xf]  ;;  %v2345_v24 = vld [vmem:[%s3733_s3 + $0x74] sm:$0xf0] }
  0x19   : > { %v1857_v25 = vld [vmem:[%s3733_s3 + $0xf0] sm:$0xf]  ;;  %v1710_v26 = vor.u32 %v2322_v20, %v1707_v21  ;;  %v2321_v28 = vld [vmem:[%s3731_s1 + $0x34] sm:$0xf0]  ;;  %v1794_v29 = vor.u32 %v2345_v24, %v1793_v23  ;;  %v2320_v31 = vld [vmem:[%s3731_s1 + $0x34] sm:$0xf] }
  0x1a   : > { %378 = vmatpush.bf16.msra.mxu0 %v1722_v10  ;;  %v1697_v27 = vld [vmem:[%s3731_s1 + $0x30] sm:$0xf]  ;;  %v2361_v30 = vld [vmem:[%s3733_s3 + $0xf4] sm:$0xf0]  ;;  %v1699_v32 = vld [vmem:[%s3731_s1 + $0x38] sm:$0xf0] }
  0x1b   : > { %391 = vmatpush.bf16.msra.mxu1 %v1726_v11  ;;  %v1858_v33 = vor.u32 %v2361_v30, %v1857_v25  ;;  %605 = vmatpush.bf16.msra.mxu2 %v1794_v29  ;;  %v1785_v34 = vld [vmem:[%s3733_s3 + $0x60] sm:$0xf]  ;;  %v2343_v35 = vld [vmem:[%s3733_s3 + $0x64] sm:$0xf0]  ;;  %v1698_v36 = vor.u32 %v2321_v28, %v1697_v27  ;;  %v1702_v41 = vor.u32 %v2320_v31, %v1699_v32  ;;  %v2318_v43 = vld [vmem:[%s3731_s1 + $0x24] sm:$0xf] }
  0x1c   : > { %v1689_v37 = vld [vmem:[%s3731_s1 + $0x20] sm:$0xf]  ;;  %v1786_v38 = vor.u32 %v2343_v35, %v1785_v34  ;;  %v2359_v40 = vld [vmem:[%s3733_s3 + $0xe4] sm:$0xf0]  ;;  %v1691_v44 = vld [vmem:[%s3731_s1 + $0x28] sm:$0xf0] }
  0x1d   : > { %618 = vmatpush.bf16.msra.mxu3 %v1858_v33  ;;  %v1849_v39 = vld [vmem:[%s3733_s3 + $0xe0] sm:$0xf]  ;;  %v2319_v42 = vld [vmem:[%s3731_s1 + $0x24] sm:$0xf0]  ;;  %v1777_v46 = vld [vmem:[%s3733_s3 + $0x50] sm:$0xf]  ;;  %v1694_v56 = vor.u32 %v2318_v43, %v1691_v44 }
  0x1e   : > { %379 = vmatpush.bf16.msra.mxu0 %v1714_v16  ;;  %v1850_v45 = vor.u32 %v2359_v40, %v1849_v39  ;;  %v2341_v47 = vld [vmem:[%s3733_s3 + $0x54] sm:$0xf0]  ;;  %v1841_v49 = vld [vmem:[%s3733_s3 + $0xd0] sm:$0xf]  ;;  %v1690_v51 = vor.u32 %v2319_v42, %v1689_v37  ;;  %v2316_v54 = vld [vmem:[%s3731_s1 + $0x14] sm:$0xf] }
  0x1f   : > { %392 = vmatpush.bf16.msra.mxu1 %v1718_v17  ;;  %606 = vmatpush.bf16.msra.mxu2 %v1786_v38  ;;  %v1778_v48 = vor.u32 %v2341_v47, %v1777_v46  ;;  %v2357_v50 = vld [vmem:[%s3733_s3 + $0xd4] sm:$0xf0]  ;;  %v1681_v52 = vld [vmem:[%s3731_s1 + $0x10] sm:$0xf]  ;;  %v1769_v57 = vld [vmem:[%s3733_s3 + $0x40] sm:$0xf] }
  0x20   : > { %v2317_v53 = vld [vmem:[%s3731_s1 + $0x14] sm:$0xf0]  ;;  %v1842_v55 = vor.u32 %v2357_v50, %v1841_v49  ;;  %v2339_v58 = vld [vmem:[%s3733_s3 + $0x44] sm:$0xf0]  ;;  %v1833_v59 = vld [vmem:[%s3733_s3 + $0xc0] sm:$0xf] }
  0x21   : > { %619 = vmatpush.bf16.msra.mxu3 %v1850_v45  ;;  %v1683_v60 = vld [vmem:[%s3731_s1 + $0x18] sm:$0xf0]  ;;  %s2814_s15 = scalar_select %p270_p10, %s2654_s28, 1  ;;  %v2355_v61 = vld [vmem:[%s3733_s3 + $0xc4] sm:$0xf0]  ;;  %v1770_v0 = vor.u32 %v2339_v58, %v1769_v57  ;;  %v1682_v1 = vor.u32 %v2317_v53, %v1681_v52  ;;  %vm1588_vm0 = vcmask 125952  }
  0x22   : > { %380 = vmatpush.bf16.msra.mxu0 %v1706_v22  ;;  %v1673_v62 = vld [vmem:[%s3731_s1] sm:$0xf]  ;;  %v2315_v63 = vld [vmem:[%s3731_s1 + $0x4] sm:$0xf0]  ;;  %v2314_v2 = vld [vmem:[%s3731_s1 + $0x4] sm:$0xf]  ;;  %v1834_v3 = vor.u32 %v2355_v61, %v1833_v59  ;;  %v1686_v6 = vor.u32 %v2316_v54, %v1683_v60 }
  0x23   : > { %393 = vmatpush.bf16.msra.mxu1 %v1710_v26  ;;  %607 = vmatpush.bf16.msra.mxu2 %v1778_v48  ;;  %v1761_v4 = vld [vmem:[%s3733_s3 + $0x30] sm:$0xf]  ;;  %v2337_v5 = vld [vmem:[%s3733_s3 + $0x34] sm:$0xf0]  ;;  %v1675_v7 = vld [vmem:[%s3731_s1 + $0x8] sm:$0xf0]  ;;  %v1674_v15 = vor.u32 %v2315_v63, %v1673_v62 }
  0x24   : > { %v1825_v8 = vld [vmem:[%s3733_s3 + $0xb0] sm:$0xf]  ;;  %v2353_v9 = vld [vmem:[%s3733_s3 + $0xb4] sm:$0xf0]  ;;  %s1670_s21 = sshll.u32 %s2814_s15, 2  ;;  %v1762_v14 = vor.u32 %v2337_v5, %v1761_v4  ;;  %v1678_v19 = vor.u32 %v2314_v2, %v1675_v7 }
  0x25   : > { %620 = vmatpush.bf16.msra.mxu3 %v1842_v55  ;;  %v2344_v10 = vld [vmem:[%s3733_s3 + $0x74] sm:$0xf]  ;;  %v1795_v11 = vld [vmem:[%s3733_s3 + $0x78] sm:$0xf0]  ;;  %v1826_v16 = vor.u32 %v2353_v9, %v1825_v8  ;;  %v1753_v17 = vld [vmem:[%s3733_s3 + $0x20] sm:$0xf]  ;;  %s273_s23 = scalar_lea.vmem %s3730_s0, %s1670_s21 }
  0x26   : > { %381 = vmatpush.bf16.msra.mxu0 %v1698_v36  ;;  %v2360_v12 = vld [vmem:[%s3733_s3 + $0xf4] sm:$0xf]  ;;  %v1859_v13 = vld [vmem:[%s3733_s3 + $0xf8] sm:$0xf0]  ;;  %v2335_v18 = vld [vmem:[%s3733_s3 + $0x24] sm:$0xf0]  ;;  %v1798_v20 = vor.u32 %v2344_v10, %v1795_v11 }
  0x27   : > { %394 = vmatpush.bf16.msra.mxu1 %v1702_v41  ;;  %608 = vmatpush.bf16.msra.mxu2 %v1770_v0  ;;  %v1817_v21 = vld [vmem:[%s3733_s3 + $0xa0] sm:$0xf]  ;;  %v2351_v22 = vld [vmem:[%s3733_s3 + $0xa4] sm:$0xf0]  ;;  %v1862_v23 = vor.u32 %v2360_v12, %v1859_v13  ;;  %v2342_v24 = vld [vmem:[%s3733_s3 + $0x64] sm:$0xf]  ;;  %v1754_v28 = vor.u32 %v2335_v18, %v1753_v17 }
  0x28   : > { %v1787_v25 = vld [vmem:[%s3733_s3 + $0x68] sm:$0xf0]  ;;  %v2358_v26 = vld [vmem:[%s3733_s3 + $0xe4] sm:$0xf]  ;;  %v274_v29 = vld [vmem:[%s273_s23] sm:$0xf]  ;;  %v1818_v30 = vor.u32 %v2351_v22, %v1817_v21  ;;  %s1602_s23 = scalar_lea.hbm %s3737_s7, %s2475_s9 }
  0x29   : > { %621 = vmatpush.bf16.msra.mxu3 %v1834_v3  ;;  %v1851_v27 = vld [vmem:[%s3733_s3 + $0xe8] sm:$0xf0]  ;;  %v1790_v31 = vor.u32 %v2342_v24, %v1787_v25  ;;  %v2340_v33 = vld [vmem:[%s3733_s3 + $0x54] sm:$0xf]  ;;  %v1779_v34 = vld [vmem:[%s3733_s3 + $0x58] sm:$0xf0] }
  0x2a   : > { %382 = vmatpush.bf16.msra.mxu0 %v1690_v51  ;;  %v1854_v32 = vor.u32 %v2358_v26, %v1851_v27  ;;  %v2356_v35 = vld [vmem:[%s3733_s3 + $0xd4] sm:$0xf]  ;;  %v1843_v36 = vld [vmem:[%s3733_s3 + $0xd8] sm:$0xf0]  ;;  %v1782_v37 = vor.u32 %v2340_v33, %v1779_v34  ;;  %v2338_v39 = vld [vmem:[%s3733_s3 + $0x44] sm:$0xf] }
  0x2b   : > { %395 = vmatpush.bf16.msra.mxu1 %v1694_v56  ;;  %609 = vmatpush.bf16.msra.mxu2 %v1762_v14  ;;  %v1846_v38 = vor.u32 %v2356_v35, %v1843_v36  ;;  %v1771_v40 = vld [vmem:[%s3733_s3 + $0x48] sm:$0xf0]  ;;  %v2354_v41 = vld [vmem:[%s3733_s3 + $0xc4] sm:$0xf]  ;;  %v2336_v45 = vld [vmem:[%s3733_s3 + $0x34] sm:$0xf] }
  0x2c   : > { %v1835_v42 = vld [vmem:[%s3733_s3 + $0xc8] sm:$0xf0]  ;;  %v1774_v43 = vor.u32 %v2338_v39, %v1771_v40  ;;  %v1763_v46 = vld [vmem:[%s3733_s3 + $0x38] sm:$0xf0]  ;;  %v2352_v47 = vld [vmem:[%s3733_s3 + $0xb4] sm:$0xf] }
  0x2d   : > { %622 = vmatpush.bf16.msra.mxu3 %v1826_v16  ;;  %v1838_v44 = vor.u32 %v2354_v41, %v1835_v42  ;;  %v1827_v48 = vld [vmem:[%s3733_s3 + $0xb8] sm:$0xf0]  ;;  %v1766_v49 = vor.u32 %v2336_v45, %v1763_v46  ;;  %v2334_v51 = vld [vmem:[%s3733_s3 + $0x24] sm:$0xf]  ;;  %v1755_v52 = vld [vmem:[%s3733_s3 + $0x28] sm:$0xf0] }
  0x2e   : > { %383 = vmatpush.bf16.msra.mxu0 %v1682_v1  ;;  %v1830_v50 = vor.u32 %v2352_v47, %v1827_v48  ;;  %v2350_v53 = vld [vmem:[%s3733_s3 + $0xa4] sm:$0xf]  ;;  %v1819_v54 = vld [vmem:[%s3733_s3 + $0xa8] sm:$0xf0]  ;;  %v1758_v55 = vor.u32 %v2334_v51, %v1755_v52  ;;  %v1745_v57 = vld [vmem:[%s3733_s3 + $0x10] sm:$0xf] }
  0x2f   : > { %396 = vmatpush.bf16.msra.mxu1 %v1686_v6  ;;  %610 = vmatpush.bf16.msra.mxu2 %v1754_v28  ;;  %v1822_v56 = vor.u32 %v2350_v53, %v1819_v54  ;;  %v2333_v58 = vld [vmem:[%s3733_s3 + $0x14] sm:$0xf0]  ;;  %v1809_v59 = vld [vmem:[%s3733_s3 + $0x90] sm:$0xf]  ;;  %v2332_v62 = vld [vmem:[%s3733_s3 + $0x14] sm:$0xf] }
  0x30   : > { %v1746_v60 = vor.u32 %v2333_v58, %v1745_v57  ;;  %v2349_v61 = vld [vmem:[%s3733_s3 + $0x94] sm:$0xf0]  ;;  %v1747_v63 = vld [vmem:[%s3733_s3 + $0x18] sm:$0xf0]  ;;  %v2348_v2 = vld [vmem:[%s3733_s3 + $0x94] sm:$0xf] }
  0x31   : > { %623 = vmatpush.bf16.msra.mxu3 %v1818_v30  ;;  %v1810_v0 = vor.u32 %v2349_v61, %v1809_v59  ;;  %v1750_v1 = vor.u32 %v2332_v62, %v1747_v63  ;;  %v1811_v3 = vld [vmem:[%s3733_s3 + $0x98] sm:$0xf0]  ;;  %v1737_v5 = vld [vmem:[%s3733_s3] sm:$0xf]  ;;  %v2331_v6 = vld [vmem:[%s3733_s3 + $0x4] sm:$0xf0] }
  0x32   : > { %384 = vmatpush.bf16.msra.mxu0 %v1674_v15  ;;  %v1814_v4 = vor.u32 %v2348_v2, %v1811_v3  ;;  %v1801_v7 = vld [vmem:[%s3733_s3 + $0x80] sm:$0xf]  ;;  %v1738_v8 = vor.u32 %v2331_v6, %v1737_v5  ;;  %v2347_v9 = vld [vmem:[%s3733_s3 + $0x84] sm:$0xf0]  ;;  %v2330_v10 = vld [vmem:[%s3733_s3 + $0x4] sm:$0xf] }
  0x33   : > { %397 = vmatpush.bf16.msra.mxu1 %v1678_v19  ;;  %611 = vmatpush.bf16.msra.mxu2 %v1746_v60  ;;  %v1739_v11 = vld [vmem:[%s3733_s3 + $0x8] sm:$0xf0]  ;;  %v1802_v12 = vor.u32 %v2347_v9, %v1801_v7  ;;  %v2346_v14 = vld [vmem:[%s3733_s3 + $0x84] sm:$0xf]  ;;  %v2285_v17 = vld [vmem:[%s3735_s5 + $0x348] sm:$0xf] }
  0x34   : > { %v1742_v13 = vor.u32 %v2330_v10, %v1739_v11  ;;  %v1803_v15 = vld [vmem:[%s3733_s3 + $0x88] sm:$0xf0]  ;;  %v2470_v18 = vld [vmem:[%s3735_s5 + $0x360] sm:$0xf0]  ;;  %v2287_v21 = vld [vmem:[%s3735_s5 + $0x364] sm:$0xf0] }
  0x35   : > { %385 = vmatmul.bf16.vlgmr.msra.gmra.mxu0 %v274_v29  ;;  %624 = vmatpush.bf16.msra.mxu3 %v1810_v0  ;;  %v1806_v16 = vor.u32 %v2346_v14, %v1803_v15  ;;  %v2467_v19 = vld [vmem:[%s3735_s5 + $0x34c] sm:$0xf]  ;;  %v2257_v22 = vld [vmem:[%s3735_s5 + $0x310] sm:$0xf]  ;;  %v2460_v25 = vld [vmem:[%s3735_s5 + $0x314] sm:$0xf] }
  0x36   : > { %631 = vmatpush.bf16.msrb.mxu0 %v1798_v20  ;;  %398 = vmatmul.bf16.vlgmr.msra.gmra.mxu1 %v274_v29  ;;  %v2286_v20 = vor.u32 %v2470_v18, %v2285_v17  ;;  %v2290_v24 = vor.u32 %v2467_v19, %v2287_v21  ;;  %v2259_v26 = vld [vmem:[%s3735_s5 + $0x32c] sm:$0xf0]  ;;  %v2061_v27 = vld [vmem:[%s3735_s5 + $0x188] sm:$0xf]  ;;  %v2414_v29 = vld [vmem:[%s3735_s5 + $0x1a0] sm:$0xf0] }
  0x37   : > { %644 = vmatpush.bf16.msrb.mxu1 %v1862_v23  ;;  %612 = vmatpush.bf16.msra.mxu2 %v1738_v8  ;;  %v2463_v23 = vld [vmem:[%s3735_s5 + $0x328] sm:$0xf0]  ;;  %v2062_v33 = vor.u32 %v2414_v29, %v2061_v27  ;;  %v2229_v35 = vld [vmem:[%s3735_s5 + $0x2d8] sm:$0xf]  ;;  %v2456_v36 = vld [vmem:[%s3735_s5 + $0x2f0] sm:$0xf0] }
  0x38   : > { %v2258_v28 = vor.u32 %v2463_v23, %v2257_v22  ;;  %v2411_v30 = vld [vmem:[%s3735_s5 + $0x18c] sm:$0xf]  ;;  %v2033_v39 = vld [vmem:[%s3735_s5 + $0x150] sm:$0xf]  ;;  %v2404_v42 = vld [vmem:[%s3735_s5 + $0x154] sm:$0xf] }
  0x39   : > { %625 = vmatpush.bf16.msra.mxu3 %v1802_v12  ;;  %v2407_v40 = vld [vmem:[%s3735_s5 + $0x168] sm:$0xf0]  ;;  %v2201_v46 = vld [vmem:[%s3735_s5 + $0x2a0] sm:$0xf]  ;;  %v2449_v47 = vld [vmem:[%s3735_s5 + $0x2b8] sm:$0xf0] }
  0x3a   : > { %632 = vmatpush.bf16.msrb.mxu0 %v1790_v31  ;;  %v2063_v31 = vld [vmem:[%s3735_s5 + $0x1a4] sm:$0xf0]  ;;  %v2034_v41 = vor.u32 %v2407_v40, %v2033_v39  ;;  %v2397_v51 = vld [vmem:[%s3735_s5 + $0x11c] sm:$0xf]  ;;  %v2446_v52 = vld [vmem:[%s3735_s5 + $0x2a4] sm:$0xf]  ;;  %v2202_v58 = vor.u32 %v2449_v47, %v2201_v46 }
  0x3b   : > { %645 = vmatpush.bf16.msrb.mxu1 %v1854_v32  ;;  %v2262_v32 = vor.u32 %v2460_v25, %v2259_v26  ;;  %v2066_v34 = vor.u32 %v2411_v30, %v2063_v31  ;;  %1381 = vmatpush.bf16.msrb.mxu2 %v2062_v33  ;;  %v2203_v53 = vld [vmem:[%s3735_s5 + $0x2bc] sm:$0xf0]  ;;  %v2007_v54 = vld [vmem:[%s3735_s5 + $0x134] sm:$0xf0]  ;;  %v2393_v59 = vld [vmem:[%s3735_s5 + $0xf8] sm:$0xf0] }
  0x3c   : > { %v1977_v57 = vld [vmem:[%s3735_s5 + $0xe0] sm:$0xf]  ;;  %v2390_v60 = vld [vmem:[%s3735_s5 + $0xe4] sm:$0xf]  ;;  %v2206_v62 = vor.u32 %v2446_v52, %v2203_v53  ;;  %v2173_v63 = vld [vmem:[%s3735_s5 + $0x268] sm:$0xf] }
  0x3d   : > { %1394 = vmatpush.bf16.msrb.mxu3 %v2286_v20  ;;  %v1979_v61 = vld [vmem:[%s3735_s5 + $0xfc] sm:$0xf0]  ;;  %v2442_v0 = vld [vmem:[%s3735_s5 + $0x280] sm:$0xf0]  ;;  %v2175_v2 = vld [vmem:[%s3735_s5 + $0x284] sm:$0xf0]  ;;  %v1978_v3 = vor.u32 %v2393_v59, %v1977_v57 }
  0x3e   : > { %633 = vmatpush.bf16.msrb.mxu0 %v1782_v37  ;;  %v2453_v37 = vld [vmem:[%s3735_s5 + $0x2dc] sm:$0xf]  ;;  %v1949_v5 = vld [vmem:[%s3735_s5 + $0xa8] sm:$0xf]  ;;  %v2174_v6 = vor.u32 %v2442_v0, %v2173_v63  ;;  %v2386_v7 = vld [vmem:[%s3735_s5 + $0xc0] sm:$0xf0] }
  0x3f   : > { %646 = vmatpush.bf16.msrb.mxu1 %v1846_v38  ;;  %v2231_v38 = vld [vmem:[%s3735_s5 + $0x2f4] sm:$0xf0]  ;;  %1382 = vmatpush.bf16.msrb.mxu2 %v2034_v41  ;;  %v2383_v8 = vld [vmem:[%s3735_s5 + $0xac] sm:$0xf]  ;;  %v1951_v9 = vld [vmem:[%s3735_s5 + $0xc4] sm:$0xf0] }
  0x40   : > { %v2234_v48 = vor.u32 %v2453_v37, %v2231_v38  ;;  %v2145_v11 = vld [vmem:[%s3735_s5 + $0x230] sm:$0xf]  ;;  %v2435_v12 = vld [vmem:[%s3735_s5 + $0x248] sm:$0xf0]  ;;  %v2432_v14 = vld [vmem:[%s3735_s5 + $0x234] sm:$0xf]  ;;  %v1954_v17 = vor.u32 %v2383_v8, %v1951_v9 }
  0x41   : > { %1395 = vmatpush.bf16.msrb.mxu3 %v2258_v28  ;;  %v2147_v15 = vld [vmem:[%s3735_s5 + $0x24c] sm:$0xf0]  ;;  %v2146_v19 = vor.u32 %v2435_v12, %v2145_v11  ;;  %v2379_v20 = vld [vmem:[%s3735_s5 + $0x88] sm:$0xf0]  ;;  %v2376_v21 = vld [vmem:[%s3735_s5 + $0x74] sm:$0xf] }
  0x42   : > { %634 = vmatpush.bf16.msrb.mxu0 %v1774_v43  ;;  %v2035_v43 = vld [vmem:[%s3735_s5 + $0x16c] sm:$0xf0]  ;;  %v2117_v25 = vld [vmem:[%s3735_s5 + $0x1f8] sm:$0xf]  ;;  %v2428_v26 = vld [vmem:[%s3735_s5 + $0x210] sm:$0xf0] }
  0x43   : > { %647 = vmatpush.bf16.msrb.mxu1 %v1838_v44  ;;  %v2230_v44 = vor.u32 %v2456_v36, %v2229_v35  ;;  %v2038_v45 = vor.u32 %v2404_v42, %v2035_v43  ;;  %v1921_v18 = vld [vmem:[%s3735_s5 + $0x70] sm:$0xf]  ;;  %v2425_v28 = vld [vmem:[%s3735_s5 + $0x1fc] sm:$0xf]  ;;  %v2119_v29 = vld [vmem:[%s3735_s5 + $0x214] sm:$0xf0]  ;;  %v2118_v33 = vor.u32 %v2428_v26, %v2117_v25 }
  0x44   : > { %v1923_v22 = vld [vmem:[%s3735_s5 + $0x8c] sm:$0xf0]  ;;  %v1922_v30 = vor.u32 %v2379_v20, %v1921_v18  ;;  %v2421_v35 = vld [vmem:[%s3735_s5 + $0x1d8] sm:$0xf0]  ;;  %v2122_v38 = vor.u32 %v2425_v28, %v2119_v29  ;;  %v2418_v39 = vld [vmem:[%s3735_s5 + $0x1c4] sm:$0xf] }
  0x45   : > { %1396 = vmatpush.bf16.msrb.mxu3 %v2230_v44  ;;  %v1926_v31 = vor.u32 %v2376_v21, %v1923_v22  ;;  %v2091_v40 = vld [vmem:[%s3735_s5 + $0x1dc] sm:$0xf0]  ;;  %v2293_v41 = vld [vmem:[%s3735_s5 + $0x350] sm:$0xf]  ;;  %v2471_v43 = vld [vmem:[%s3735_s5 + $0x368] sm:$0xf0] }
  0x46   : > { %635 = vmatpush.bf16.msrb.mxu0 %v1766_v49  ;;  %v2005_v49 = vld [vmem:[%s3735_s5 + $0x118] sm:$0xf]  ;;  %v2468_v47 = vld [vmem:[%s3735_s5 + $0x354] sm:$0xf]  ;;  %v2365_v63 = vld [vmem:[%s3735_s5 + $0x18] sm:$0xf0] }
  0x47   : > { %648 = vmatpush.bf16.msrb.mxu1 %v1830_v50  ;;  %v2400_v50 = vld [vmem:[%s3735_s5 + $0x130] sm:$0xf0]  ;;  %v1893_v44 = vld [vmem:[%s3735_s5 + $0x38] sm:$0xf]  ;;  %v2461_v0 = vld [vmem:[%s3735_s5 + $0x31c] sm:$0xf] }
  0x48   : > { %v2464_v59 = vld [vmem:[%s3735_s5 + $0x330] sm:$0xf0]  ;;  %v2071_v9 = vld [vmem:[%s3735_s5 + $0x1ac] sm:$0xf0]  ;;  %v2454_v18 = vld [vmem:[%s3735_s5 + $0x2e4] sm:$0xf] }
  0x49   : > { %1397 = vmatpush.bf16.msrb.mxu3 %v2202_v58  ;;  %v2265_v58 = vld [vmem:[%s3735_s5 + $0x318] sm:$0xf]  ;;  %v2412_v8 = vld [vmem:[%s3735_s5 + $0x194] sm:$0xf]  ;;  %v2405_v22 = vld [vmem:[%s3735_s5 + $0x15c] sm:$0xf] }
  0x4a   : > { %636 = vmatpush.bf16.msrb.mxu0 %v1758_v55  ;;  %v2006_v55 = vor.u32 %v2400_v50, %v2005_v49  ;;  %v2369_v50 = vld [vmem:[%s3735_s5 + $0x3c] sm:$0xf]  ;;  %v2041_v20 = vld [vmem:[%s3735_s5 + $0x158] sm:$0xf]  ;;  %v2408_v21 = vld [vmem:[%s3735_s5 + $0x170] sm:$0xf0] }
  0x4b   : > { %649 = vmatpush.bf16.msrb.mxu1 %v1822_v56  ;;  %v2010_v56 = vor.u32 %v2397_v51, %v2007_v54  ;;  %v1895_v51 = vld [vmem:[%s3735_s5 + $0x54] sm:$0xf0]  ;;  %v2094_v54 = vor.u32 %v2418_v39, %v2091_v40  ;;  %v2209_v26 = vld [vmem:[%s3735_s5 + $0x2a8] sm:$0xf]  ;;  %v2042_v28 = vor.u32 %v2408_v21, %v2041_v20  ;;  %v2443_v39 = vld [vmem:[%s3735_s5 + $0x288] sm:$0xf0] }
  0x4c   : > { %1383 = vmatpush.bf16.msrb.mxu2 %v2006_v55  ;;  %v2370_v21 = vld [vmem:[%s3735_s5 + $0x44] sm:$0xf]  ;;  %s1606_s15 = sshll.u32 %s1602_s23, 4  ;;  %s1607_s15 = int_to_ptr.hbm [resolvable:$true] %s1606_s15 }
  0x4d   : > { %1398 = vmatpush.bf16.msrb.mxu3 %v2174_v6  ;;  %s2543_s18 = sshra.s32 %s1607_s15, 4  ;;  %s2544_s18 = int_to_ptr.hbm [resolvable:$true] %s2543_s18 }
  0x4e   : > { %637 = vmatpush.bf16.msrb.mxu0 %v1750_v1  ;;  %v2439_v1 = vld [vmem:[%s3735_s5 + $0x26c] sm:$0xf]  ;;  %s2545_s28 = scalar_lea.hbm %s2544_s18, 28  ;;  %p2550_p0 = scmp.lt.s32.totalorder %s2544_s18, %s3737_s7 }
  0x4f   : > { %650 = vmatpush.bf16.msrb.mxu1 %v1814_v4  ;;  %v1982_v4 = vor.u32 %v2390_v60, %v1979_v61  ;;  %v2178_v10 = vor.u32 %v2439_v1, %v2175_v2  ;;  %v1865_v60 = vld [vmem:[%s3735_s5] sm:$0xf]  ;;  %v2267_v1 = vld [vmem:[%s3735_s5 + $0x334] sm:$0xf0]  ;;  %p2546_p11 = scmp.ne.s32.totalorder %s2544_s18, %s2545_s28  ;;  %p2551_p1 = scmp.lt.s32.totalorder %s2549_s20, %s2545_s28 }
  0x50   : > { %1384 = vmatpush.bf16.msrb.mxu2 %v1978_v3  ;;  %v2362_v3 = vld [vmem:[%s3735_s5 + $0x4] sm:$0xf]  ;;  %v1866_v11 = vor.u32 %v2365_v63, %v1865_v60  ;;  %v2270_v12 = vor.u32 %v2461_v0, %v2267_v1  ;;  %v2125_v0 = vld [vmem:[%s3735_s5 + $0x200] sm:$0xf]  ;;  %v2429_v1 = vld [vmem:[%s3735_s5 + $0x218] sm:$0xf0] }
  0x51   : > { %1399 = vmatpush.bf16.msrb.mxu3 %v2146_v19  ;;  %v2239_v19 = vld [vmem:[%s3735_s5 + $0x2fc] sm:$0xf0]  ;;  %p2547_p12 = pnand %p2546_p11, %p2671_p5  ;;  %p2552_p2 = por %p2551_p1, %p2550_p0 }
  0x52   : > { %638 = vmatpush.bf16.msrb.mxu0 %v1742_v13  ;;  %v291_v13 = vld [vmem:[%s3732_s2] sm:$0x3]  ;;  %v2242_v25 = vor.u32 %v2454_v18, %v2239_v19  ;;  %v2373_v19 = vld [vmem:[%s3735_s5 + $0x58] sm:$0xf0] }
  0x53   : > { %651 = vmatpush.bf16.msrb.mxu1 %v1806_v16  ;;  %v1950_v16 = vor.u32 %v2386_v7, %v1949_v5  ;;  %v293_v23 = vperm.slane %v291_v13, 0  ;;  %v294_v27 = vperm.slane %v291_v13, 1  ;;  %v2069_v5 = vld [vmem:[%s3735_s5 + $0x190] sm:$0xf]  ;;  %v2415_v7 = vld [vmem:[%s3735_s5 + $0x1a8] sm:$0xf0]  ;;  %p2548_p13 = pneg %p2547_p12 }
  0x54   : > { %v1901_v18 = vld [vmem:[%s3735_s5 + $0x40] sm:$0xf] }
  0x55   : > { %1385 = vmatpush.bf16.msrb.mxu2 %v1950_v16  ;;  %1400 = vmatpush.bf16.msrb.mxu3 %v2118_v33  ;;  %v2070_v16 = vor.u32 %v2415_v7, %v2069_v5  ;;  %v2401_v33 = vld [vmem:[%s3735_s5 + $0x138] sm:$0xf0]  ;;  %v2380_v7 = vld [vmem:[%s3735_s5 + $0x90] sm:$0xf0]  ;;  %v1902_v20 = vor.u32 %v2373_v19, %v1901_v18  ;;  %v2021_v19 = vld [vmem:[%s3735_s5 + $0x128] sm:$0xf]  ;;  %p2553_p3 = pnand %p2552_p2, %p2548_p13 }
  0x56   : > { %1407 = vmatpush.bf16.msra.mxu0 %v2066_v34  ;;  %v2089_v34 = vld [vmem:[%s3735_s5 + $0x1c0] sm:$0xf] }
  0x57   : > { %1420 = vmatpush.bf16.msra.mxu1 %v2290_v24  ;;  %v2150_v24 = vor.u32 %v2432_v14, %v2147_v15  ;;  %v2090_v53 = vor.u32 %v2421_v35, %v2089_v34  ;;  %v2237_v14 = vld [vmem:[%s3735_s5 + $0x2e0] sm:$0xf]  ;;  %v2457_v15 = vld [vmem:[%s3735_s5 + $0x2f8] sm:$0xf0]  ;;  %v2398_v34 = vld [vmem:[%s3735_s5 + $0x124] sm:$0xf] }
  0x58   : > { %v2015_v35 = vld [vmem:[%s3735_s5 + $0x13c] sm:$0xf0] }
  0x59   : > { %1386 = vmatpush.bf16.msrb.mxu2 %v1922_v30  ;;  %1401 = vmatpush.bf16.msrb.mxu3 %v2090_v53  ;;  %v2447_v30 = vld [vmem:[%s3735_s5 + $0x2ac] sm:$0xf]  ;;  %v2436_v53 = vld [vmem:[%s3735_s5 + $0x250] sm:$0xf0] }
  0x5a   : > { %1408 = vmatpush.bf16.msra.mxu0 %v2038_v45  ;;  %v2372_v45 = vld [vmem:[%s3735_s5 + $0x50] sm:$0xf0] }
  0x5b   : > { %1421 = vmatpush.bf16.msra.mxu1 %v2262_v32  ;;  %v1894_v57 = vor.u32 %v2372_v45, %v1893_v44  ;;  %v1985_v44 = vld [vmem:[%s3735_s5 + $0xe8] sm:$0xf]  ;;  %v2394_v45 = vld [vmem:[%s3735_s5 + $0x100] sm:$0xf0] }
  0x5d   : > { %1387 = vmatpush.bf16.msrb.mxu2 %v1894_v57 }
  0x5e   : > { %1409 = vmatpush.bf16.msra.mxu0 %v2010_v56  ;;  %v2294_v56 = vor.u32 %v2471_v43, %v2293_v41  ;;  %v2018_v41 = vor.u32 %v2398_v34, %v2015_v35  ;;  %v2183_v43 = vld [vmem:[%s3735_s5 + $0x28c] sm:$0xf0] }
  0x5f   : > { %1422 = vmatpush.bf16.msra.mxu1 %v2234_v48  ;;  %v2295_v48 = vld [vmem:[%s3735_s5 + $0x36c] sm:$0xf0] }
  0x60   : > { %v2298_v61 = vor.u32 %v2468_v47, %v2295_v48  ;;  %v1987_v47 = vld [vmem:[%s3735_s5 + $0x104] sm:$0xf0] }
  0x61   : > { %1388 = vmatpush.bf16.msrb.mxu2 %v1866_v11 }
  0x62   : > { %1410 = vmatpush.bf16.msra.mxu0 %v1982_v4  ;;  %v1867_v4 = vld [vmem:[%s3735_s5 + $0x1c] sm:$0xf0] }
  0x63   : > { %1423 = vmatpush.bf16.msra.mxu1 %v2206_v62  ;;  %v1898_v62 = vor.u32 %v2369_v50, %v1895_v51  ;;  %v1870_v13 = vor.u32 %v2362_v3, %v1867_v4  ;;  %v1986_v50 = vor.u32 %v2394_v45, %v1985_v44  ;;  %v2426_v3 = vld [vmem:[%s3735_s5 + $0x204] sm:$0xf]  ;;  %v2127_v4 = vld [vmem:[%s3735_s5 + $0x21c] sm:$0xf0] }
  0x64   : > { %v2130_v5 = vor.u32 %v2426_v3, %v2127_v4  ;;  %v2273_v45 = vld [vmem:[%s3735_s5 + $0x320] sm:$0xf] }
  0x65   : > { %v2049_v4 = vld [vmem:[%s3735_s5 + $0x160] sm:$0xf] }
  0x66   : > { %1411 = vmatpush.bf16.msra.mxu0 %v1954_v17  ;;  %v2074_v17 = vor.u32 %v2412_v8, %v2071_v9  ;;  %v2377_v9 = vld [vmem:[%s3735_s5 + $0x7c] sm:$0xf] }
  0x67   : > { %1424 = vmatpush.bf16.msra.mxu1 %v2178_v10  ;;  %v2266_v10 = vor.u32 %v2464_v59, %v2265_v58  ;;  %v1957_v58 = vld [vmem:[%s3735_s5 + $0xb0] sm:$0xf]  ;;  %v2387_v59 = vld [vmem:[%s3735_s5 + $0xc8] sm:$0xf0] }
  0x68   : > { %v1958_v60 = vor.u32 %v2387_v59, %v1957_v58  ;;  %v2079_v58 = vld [vmem:[%s3735_s5 + $0x1b4] sm:$0xf0] }
  0x6a   : > { %1412 = vmatpush.bf16.msra.mxu0 %v1926_v31  ;;  %v2211_v31 = vld [vmem:[%s3735_s5 + $0x2c4] sm:$0xf0] }
  0x6b   : > { %1425 = vmatpush.bf16.msra.mxu1 %v2150_v24  ;;  %v2238_v24 = vor.u32 %v2457_v15, %v2237_v14  ;;  %v2419_v15 = vld [vmem:[%s3735_s5 + $0x1cc] sm:$0xf] }
  0x6e   : > { %1413 = vmatpush.bf16.msra.mxu0 %v1898_v62  ;;  %v1959_v62 = vld [vmem:[%s3735_s5 + $0xcc] sm:$0xf0] }
  0x6f   : > { %1426 = vmatpush.bf16.msra.mxu1 %v2122_v38  ;;  %v2181_v38 = vld [vmem:[%s3735_s5 + $0x270] sm:$0xf] }
  0x70   : > { %v2182_v48 = vor.u32 %v2443_v39, %v2181_v38  ;;  %v2472_v38 = vld [vmem:[%s3735_s5 + $0x370] sm:$0xf0]  ;;  %v2469_v39 = vld [vmem:[%s3735_s5 + $0x35c] sm:$0xf] }
  0x72   : > { %1414 = vmatpush.bf16.msra.mxu0 %v1870_v13  ;;  %v2422_v13 = vld [vmem:[%s3735_s5 + $0x1e0] sm:$0xf0] }
  0x73   : > { %1427 = vmatpush.bf16.msra.mxu1 %v2094_v54 }
  0xb2   : > { %v386_v32 = vpop.f32.mrf.mxu0 }
  0xb3   : > { %v387_v36 = vadd.f32 %v386_v32, %v293_v23  ;;  %v399_v37 = vpop.f32.mrf.mxu1  ;;  %v2043_v23 = vld [vmem:[%s3735_s5 + $0x174] sm:$0xf0]  ;;  %v2013_v32 = vld [vmem:[%s3735_s5 + $0x120] sm:$0xf] }
  0xb4   : > { %v400_v42 = vadd.f32 %v399_v37, %v294_v27  ;;  %v2450_v27 = vld [vmem:[%s3735_s5 + $0x2c0] sm:$0xf0]  ;;  %v2046_v29 = vor.u32 %v2405_v22, %v2043_v23  ;;  %v2214_v37 = vor.u32 %v2447_v30, %v2211_v31  ;;  %v2014_v40 = vor.u32 %v2401_v33, %v2013_v32  ;;  %v1903_v22 = vld [vmem:[%s3735_s5 + $0x5c] sm:$0xf0] }
  0xb5   : > { %v403_v46 = vmax.f32 %v387_v36, 0.0  ;;  %v2210_v36 = vor.u32 %v2450_v27, %v2209_v26  ;;  %v1906_v23 = vor.u32 %v2370_v21, %v1903_v22  ;;  %v2363_v27 = vld [vmem:[%s3735_s5 + $0xc] sm:$0xf]  ;;  %v439_v30 = vld [vmem:[%s3734_s4] sm:$0x3] }
  0xb6   : > { %v404_v49 = vmax.f32 %v400_v42, 0.0  ;;  %v2440_v42 = vld [vmem:[%s3735_s5 + $0x274] sm:$0xf]  ;;  %v442_v31 = vperm.slane %v439_v30, 1  ;;  %v441_v35 = vperm.slane %v439_v30, 0 }
  0xb7   : > { %v405_v52 = vpack.c.bf16 %v403_v46, %v403_v46  ;;  %v2391_v46 = vld [vmem:[%s3735_s5 + $0xec] sm:$0xf]  ;;  %v2023_v22 = vld [vmem:[%s3735_s5 + $0x144] sm:$0xf0] }
  0xb8   : > { %v406_v55 = vpack.c.bf16 %v404_v49, %v404_v49  ;;  %v2186_v49 = vor.u32 %v2440_v42, %v2183_v43  ;;  %v1990_v51 = vor.u32 %v2391_v46, %v1987_v47  ;;  %v2399_v21 = vld [vmem:[%s3735_s5 + $0x12c] sm:$0xf] }
  0xb9   : > { %613 = vmatmul.bf16.vlgmr.msra.gmra.mxu2 %v405_v52  ;;  %639 = vmatmul.bf16.vlgmr.msrb.gmra.mxu0 %v405_v52  ;;  %v2153_v52 = vld [vmem:[%s3735_s5 + $0x238] sm:$0xf]  ;;  %v2026_v30 = vor.u32 %v2399_v21, %v2023_v22  ;;  %v1883_v21 = vld [vmem:[%s3735_s5 + $0x2c] sm:$0xf0]  ;;  %v2085_v22 = vld [vmem:[%s3735_s5 + $0x1a0] sm:$0xf] }
  0xba   : > { %626 = vmatmul.bf16.vlgmr.msra.gmra.mxu3 %v406_v55  ;;  %652 = vmatmul.bf16.vlgmr.msrb.gmra.mxu1 %v406_v55  ;;  %v388_v2 = vpop.f32.mrf.mxu0  ;;  %v2154_v54 = vor.u32 %v2436_v53, %v2153_v52  ;;  %v2433_v55 = vld [vmem:[%s3735_s5 + $0x23c] sm:$0xf]  ;;  %v2077_v53 = vld [vmem:[%s3735_s5 + $0x198] sm:$0xf] }
  0xbb   : > { %v401_v6 = vpop.f32.mrf.mxu1  ;;  %1446 = vmatpush.bf16.msra.mxu3 %v2294_v56  ;;  %1472 = vmatpush.bf16.msrb.mxu1 %v2298_v61  ;;  %v2155_v56 = vld [vmem:[%s3735_s5 + $0x254] sm:$0xf0]  ;;  %v2384_v61 = vld [vmem:[%s3735_s5 + $0xb4] sm:$0xf]  ;;  %v2126_v2 = vor.u32 %v2429_v1, %v2125_v0  ;;  %v2455_v0 = vld [vmem:[%s3735_s5 + $0x2ec] sm:$0xf] }
  0xbc   : > { %1433 = vmatpush.bf16.msra.mxu2 %v2070_v16  ;;  %1459 = vmatpush.bf16.msrb.mxu0 %v2074_v17  ;;  %v2158_v57 = vor.u32 %v2433_v55, %v2155_v56  ;;  %v1962_v63 = vor.u32 %v2384_v61, %v1959_v62  ;;  %v1929_v6 = vld [vmem:[%s3735_s5 + $0x78] sm:$0xf]  ;;  %v2099_v16 = vld [vmem:[%s3735_s5 + $0x1e4] sm:$0xf0]  ;;  %v2416_v56 = vld [vmem:[%s3735_s5 + $0x1b0] sm:$0xf0] }
  0xbd   : > { %v1930_v8 = vor.u32 %v2380_v7, %v1929_v6  ;;  %v2102_v17 = vor.u32 %v2419_v15, %v2099_v16  ;;  %v2245_v61 = vld [vmem:[%s3735_s5 + $0x2e8] sm:$0xf]  ;;  %v2458_v62 = vld [vmem:[%s3735_s5 + $0x300] sm:$0xf0]  ;;  %v2409_v6 = vld [vmem:[%s3735_s5 + $0x178] sm:$0xf0] }
  0xbe   : > { %v2247_v1 = vld [vmem:[%s3735_s5 + $0x304] sm:$0xf0]  ;;  %v2406_v7 = vld [vmem:[%s3735_s5 + $0x164] sm:$0xf]  ;;  %v2448_v15 = vld [vmem:[%s3735_s5 + $0x2b4] sm:$0xf] }
  0xbf   : > { %1447 = vmatpush.bf16.msra.mxu3 %v2266_v10  ;;  %1473 = vmatpush.bf16.msrb.mxu1 %v2270_v12  ;;  %v1931_v10 = vld [vmem:[%s3735_s5 + $0x94] sm:$0xf0]  ;;  %v2097_v12 = vld [vmem:[%s3735_s5 + $0x1c8] sm:$0xf]  ;;  %v2219_v16 = vld [vmem:[%s3735_s5 + $0x2cc] sm:$0xf0] }
  0xc0   : > { %1434 = vmatpush.bf16.msra.mxu2 %v2042_v28  ;;  %1460 = vmatpush.bf16.msrb.mxu0 %v2046_v29  ;;  %v1934_v11 = vor.u32 %v2377_v9, %v1931_v10  ;;  %v2098_v14 = vor.u32 %v2422_v13, %v2097_v12  ;;  %v1875_v28 = vld [vmem:[%s3735_s5 + $0x24] sm:$0xf0]  ;;  %v2246_v10 = vor.u32 %v2458_v62, %v2245_v61  ;;  %v2217_v12 = vld [vmem:[%s3735_s5 + $0x2b0] sm:$0xf] }
  0xc1   : > { %v1878_v29 = vor.u32 %v2363_v27, %v1875_v28  ;;  %v2441_v27 = vld [vmem:[%s3735_s5 + $0x27c] sm:$0xf]  ;;  %v2191_v28 = vld [vmem:[%s3735_s5 + $0x294] sm:$0xf0]  ;;  %v2105_v62 = vld [vmem:[%s3735_s5 + $0x1d0] sm:$0xf] }
  0xc3   : > { %1448 = vmatpush.bf16.msra.mxu3 %v2238_v24  ;;  %1474 = vmatpush.bf16.msrb.mxu1 %v2242_v25  ;;  %v1873_v24 = vld [vmem:[%s3735_s5 + $0x8] sm:$0xf]  ;;  %v2366_v25 = vld [vmem:[%s3735_s5 + $0x20] sm:$0xf0] }
  0xc4   : > { %1435 = vmatpush.bf16.msra.mxu2 %v2014_v40  ;;  %1461 = vmatpush.bf16.msrb.mxu0 %v2018_v41  ;;  %v1874_v26 = vor.u32 %v2366_v25, %v1873_v24  ;;  %v2303_v40 = vld [vmem:[%s3735_s5 + $0x374] sm:$0xf0]  ;;  %v2222_v24 = vor.u32 %v2448_v15, %v2219_v16  ;;  %v2281_v16 = vld [vmem:[%s3735_s5 + $0x328] sm:$0xf] }
  0xc5   : > { %v2306_v44 = vor.u32 %v2469_v39, %v2303_v40  ;;  %v2189_v25 = vld [vmem:[%s3735_s5 + $0x278] sm:$0xf]  ;;  %v2434_v39 = vld [vmem:[%s3735_s5 + $0x244] sm:$0xf]  ;;  %v2163_v40 = vld [vmem:[%s3735_s5 + $0x25c] sm:$0xf0] }
  0xc7   : > { %1449 = vmatpush.bf16.msra.mxu3 %v2210_v36  ;;  %1475 = vmatpush.bf16.msrb.mxu1 %v2214_v37  ;;  %v2301_v36 = vld [vmem:[%s3735_s5 + $0x358] sm:$0xf] }
  0xc8   : > { %1436 = vmatpush.bf16.msra.mxu2 %v1986_v50  ;;  %1462 = vmatpush.bf16.msrb.mxu0 %v1990_v51  ;;  %v2302_v43 = vor.u32 %v2472_v38, %v2301_v36  ;;  %v2462_v50 = vld [vmem:[%s3735_s5 + $0x324] sm:$0xf]  ;;  %v2275_v51 = vld [vmem:[%s3735_s5 + $0x33c] sm:$0xf0]  ;;  %v2194_v36 = vor.u32 %v2441_v27, %v2191_v28  ;;  %v2437_v38 = vld [vmem:[%s3735_s5 + $0x258] sm:$0xf0] }
  0xc9   : > { %v2253_v27 = vld [vmem:[%s3735_s5 + $0x2f0] sm:$0xf]  ;;  %v2459_v28 = vld [vmem:[%s3735_s5 + $0x308] sm:$0xf0] }
  0xcb   : > { %1450 = vmatpush.bf16.msra.mxu3 %v2182_v48  ;;  %1476 = vmatpush.bf16.msrb.mxu1 %v2186_v49  ;;  %v2465_v49 = vld [vmem:[%s3735_s5 + $0x338] sm:$0xf0] }
  0xcc   : > { %1437 = vmatpush.bf16.msra.mxu2 %v1958_v60  ;;  %1463 = vmatpush.bf16.msrb.mxu0 %v1962_v63  ;;  %v2274_v59 = vor.u32 %v2465_v49, %v2273_v45  ;;  %v2278_v60 = vor.u32 %v2462_v50, %v2275_v51  ;;  %v2385_v45 = vld [vmem:[%s3735_s5 + $0xbc] sm:$0xf]  ;;  %v2166_v49 = vor.u32 %v2434_v39, %v2163_v40  ;;  %v2133_v50 = vld [vmem:[%s3735_s5 + $0x208] sm:$0xf]  ;;  %v2430_v51 = vld [vmem:[%s3735_s5 + $0x220] sm:$0xf0] }
  0xcd   : > { %v2197_v39 = vld [vmem:[%s3735_s5 + $0x280] sm:$0xf]  ;;  %v2445_v40 = vld [vmem:[%s3735_s5 + $0x298] sm:$0xf0] }
  0xcf   : > { %1451 = vmatpush.bf16.msra.mxu3 %v2154_v54  ;;  %1477 = vmatpush.bf16.msrb.mxu1 %v2158_v57  ;;  %v2413_v57 = vld [vmem:[%s3735_s5 + $0x19c] sm:$0xf] }
  0xd0   : > { %1438 = vmatpush.bf16.msra.mxu2 %v1930_v8  ;;  %1464 = vmatpush.bf16.msrb.mxu0 %v1934_v11  ;;  %v2082_v3 = vor.u32 %v2413_v57, %v2079_v58  ;;  %v2051_v8 = vld [vmem:[%s3735_s5 + $0x17c] sm:$0xf0]  ;;  %v2250_v11 = vor.u32 %v2455_v0, %v2247_v1  ;;  %v2381_v57 = vld [vmem:[%s3735_s5 + $0x98] sm:$0xf0]  ;;  %v2378_v58 = vld [vmem:[%s3735_s5 + $0x84] sm:$0xf] }
  0xd1   : > { %v2054_v18 = vor.u32 %v2406_v7, %v2051_v8  ;;  %v2420_v0 = vld [vmem:[%s3735_s5 + $0x1d4] sm:$0xf]  ;;  %v2107_v1 = vld [vmem:[%s3735_s5 + $0x1ec] sm:$0xf0]  ;;  %v1909_v7 = vld [vmem:[%s3735_s5 + $0x48] sm:$0xf] }
  0xd2   : > { %v2374_v8 = vld [vmem:[%s3735_s5 + $0x60] sm:$0xf0] }
  0xd3   : > { %1452 = vmatpush.bf16.msra.mxu3 %v2126_v2  ;;  %1478 = vmatpush.bf16.msrb.mxu1 %v2130_v5  ;;  %v2078_v2 = vor.u32 %v2416_v56, %v2077_v53  ;;  %v2135_v53 = vld [vmem:[%s3735_s5 + $0x224] sm:$0xf0]  ;;  %v1937_v56 = vld [vmem:[%s3735_s5 + $0x80] sm:$0xf] }
  0xd4   : > { %1439 = vmatpush.bf16.msra.mxu2 %v1902_v20  ;;  %1465 = vmatpush.bf16.msrb.mxu0 %v1906_v23  ;;  %v2402_v20 = vld [vmem:[%s3735_s5 + $0x140] sm:$0xf0] }
  0xd7   : > { %1453 = vmatpush.bf16.msra.mxu3 %v2098_v14  ;;  %1479 = vmatpush.bf16.msrb.mxu1 %v2102_v17  ;;  %v2451_v14 = vld [vmem:[%s3735_s5 + $0x2c8] sm:$0xf0]  ;;  %v2050_v17 = vor.u32 %v2409_v6, %v2049_v4  ;;  %v2309_v4 = vld [vmem:[%s3735_s5 + $0x360] sm:$0xf]  ;;  %v2473_v6 = vld [vmem:[%s3735_s5 + $0x378] sm:$0xf0] }
  0xd8   : > { %1440 = vmatpush.bf16.msra.mxu2 %v1874_v26  ;;  %1466 = vmatpush.bf16.msrb.mxu0 %v1878_v29  ;;  %v2218_v23 = vor.u32 %v2451_v14, %v2217_v12  ;;  %v2444_v26 = vld [vmem:[%s3735_s5 + $0x290] sm:$0xf0]  ;;  %v2022_v29 = vor.u32 %v2402_v20, %v2021_v19  ;;  %v2110_v12 = vor.u32 %v2420_v0, %v2107_v1  ;;  %v2367_v19 = vld [vmem:[%s3735_s5 + $0x28] sm:$0xf0]  ;;  %v1889_v1 = vld [vmem:[%s3735_s5 + $0x18] sm:$0xf] }
  0xd9   : > { %v1910_v14 = vor.u32 %v2374_v8, %v1909_v7  ;;  %v2364_v20 = vld [vmem:[%s3735_s5 + $0x14] sm:$0xf] }
 0x136   : > { %v640_v32 = vpop.f32.mrf.mxu0 }
 0x137   : > { %v641_v33 = vadd.f32 %v640_v32, %v442_v31  ;;  %v653_v34 = vpop.f32.mrf.mxu1  ;;  %v1993_v31 = vld [vmem:[%s3735_s5 + $0xf0] sm:$0xf]  ;;  %v2395_v32 = vld [vmem:[%s3735_s5 + $0x108] sm:$0xf0] }
 0x139   : > { %v654_v37 = vadd.f32 %v653_v34, %v641_v33  ;;  %v2392_v33 = vld [vmem:[%s3735_s5 + $0xf4] sm:$0xf]  ;;  %v1995_v34 = vld [vmem:[%s3735_s5 + $0x10c] sm:$0xf0] }
 0x13b   : > { %v658_v41 = vmax.f32 %v654_v37, 0.0  ;;  %v2161_v37 = vld [vmem:[%s3735_s5 + $0x240] sm:$0xf] }
 0x13c   : > { %v614_v42 = vpop.f32.mrf.mxu2 }
 0x13d   : > { %v3384_v46 = vpack.c.bf16 %v658_v41, %v658_v41  ;;  %v615_v47 = vadd.f32 %v614_v42, %v441_v35  ;;  %v627_v48 = vpop.f32.mrf.mxu3  ;;  %v2190_v35 = vor.u32 %v2444_v26, %v2189_v25  ;;  %v1994_v41 = vor.u32 %v2395_v32, %v1993_v31  ;;  %v2410_v31 = vld [vmem:[%s3735_s5 + $0x180] sm:$0xf0] }
 0x13e   : > { %v642_v52 = vpop.f32.mrf.mxu0  ;;  %v1998_v42 = vor.u32 %v2392_v33, %v1995_v34  ;;  %v1886_v26 = vor.u32 %v2364_v20, %v1883_v21  ;;  %v2254_v32 = vor.u32 %v2459_v28, %v2253_v27  ;;  %v2225_v33 = vld [vmem:[%s3735_s5 + $0x2b8] sm:$0xf]  ;;  %v2452_v34 = vld [vmem:[%s3735_s5 + $0x2d0] sm:$0xf0] }
 0x13f   : > { %v628_v54 = vadd.f32 %v627_v48, %v615_v47  ;;  %v655_v55 = vpop.f32.mrf.mxu1  ;;  %1402 = vmatmul.bf16.vlgmr.msrb.gmra.mxu3 %v3384_v46  ;;  %1428 = vmatmul.bf16.vlgmr.msra.gmra.mxu1 %v3384_v46  ;;  %v1967_v47 = vld [vmem:[%s3735_s5 + $0xd4] sm:$0xf0]  ;;  %v2162_v48 = vor.u32 %v2437_v38, %v2161_v37  ;;  %v2427_v52 = vld [vmem:[%s3735_s5 + $0x20c] sm:$0xf]  ;;  %v2226_v38 = vor.u32 %v2452_v34, %v2225_v33 }
 0x140   : > { %1498 = vmatpush.bf16.msrb.mxu3 %v2302_v43  ;;  %1524 = vmatpush.bf16.msra.mxu1 %v2306_v44  ;;  %v1965_v43 = vld [vmem:[%s3735_s5 + $0xb8] sm:$0xf]  ;;  %v2388_v44 = vld [vmem:[%s3735_s5 + $0xd0] sm:$0xf0]  ;;  %v1970_v55 = vor.u32 %v2385_v45, %v1967_v47  ;;  %v2138_v61 = vor.u32 %v2427_v52, %v2135_v53  ;;  %v2403_v37 = vld [vmem:[%s3735_s5 + $0x148] sm:$0xf0] }
 0x141   : > { %v657_v63 = vmax.f32 %v628_v54, 0.0  ;;  %v1966_v54 = vor.u32 %v2388_v44, %v1965_v43  ;;  %v2396_v43 = vld [vmem:[%s3735_s5 + $0x110] sm:$0xf0]  ;;  %v2198_v44 = vor.u32 %v2445_v40, %v2197_v39  ;;  %v2169_v45 = vld [vmem:[%s3735_s5 + $0x248] sm:$0xf] }
 0x142   : > { %v2438_v47 = vld [vmem:[%s3735_s5 + $0x260] sm:$0xf0]  ;;  %v2141_v52 = vld [vmem:[%s3735_s5 + $0x210] sm:$0xf]  ;;  %v2431_v53 = vld [vmem:[%s3735_s5 + $0x228] sm:$0xf0] }
 0x143   : > { %v3424_v5 = vpack.c.bf16 %v657_v63, %v657_v63  ;;  %v2423_v63 = vld [vmem:[%s3735_s5 + $0x1e8] sm:$0xf0] }
 0x144   : > { %1499 = vmatpush.bf16.msrb.mxu3 %v2274_v59  ;;  %v616_v9 = vpop.f32.mrf.mxu2  ;;  %1525 = vmatpush.bf16.msra.mxu1 %v2278_v60  ;;  %v1939_v59 = vld [vmem:[%s3735_s5 + $0x9c] sm:$0xf0]  ;;  %v2134_v60 = vor.u32 %v2430_v51, %v2133_v50  ;;  %v2389_v50 = vld [vmem:[%s3735_s5 + $0xd8] sm:$0xf0]  ;;  %v2170_v51 = vor.u32 %v2438_v47, %v2169_v45 }
 0x145   : > { %v629_v13 = vpop.f32.mrf.mxu3  ;;  %1389 = vmatmul.bf16.vlgmr.msrb.gmra.mxu2 %v3424_v5  ;;  %1415 = vmatmul.bf16.vlgmr.msra.gmra.mxu0 %v3424_v5  ;;  %v2371_v9 = vld [vmem:[%s3735_s5 + $0x4c] sm:$0xf] }
 0x146   : > { %1485 = vmatpush.bf16.msrb.mxu2 %v2078_v2  ;;  %1511 = vmatpush.bf16.msra.mxu0 %v2082_v3  ;;  %v1938_v2 = vor.u32 %v2381_v57, %v1937_v56  ;;  %v1942_v3 = vor.u32 %v2378_v58, %v1939_v59  ;;  %v2310_v13 = vor.u32 %v2473_v6, %v2309_v4  ;;  %v2382_v56 = vld [vmem:[%s3735_s5 + $0xa0] sm:$0xf0]  ;;  %v2113_v58 = vld [vmem:[%s3735_s5 + $0x1d8] sm:$0xf]  ;;  %v2424_v59 = vld [vmem:[%s3735_s5 + $0x1f0] sm:$0xf0] }
 0x147   : > { %v2142_v57 = vor.u32 %v2431_v53, %v2141_v52  ;;  %v3678_v6 = vld [vmem:[%s3736_s6] sm:$0x7f] }
 0x148   : > { %1500 = vmatpush.bf16.msrb.mxu3 %v2246_v10  ;;  %1526 = vmatpush.bf16.msra.mxu1 %v2250_v11  ;;  %v1911_v10 = vld [vmem:[%s3735_s5 + $0x64] sm:$0xf0]  ;;  %v2106_v11 = vor.u32 %v2423_v63, %v2105_v62  ;;  %v2375_v62 = vld [vmem:[%s3735_s5 + $0x68] sm:$0xf0]  ;;  %v2114_v63 = vor.u32 %v2424_v59, %v2113_v58  ;;  %v795_v47 = vperm.slane %v3678_v6, 4 }
 0x149   : > { %v1914_v15 = vor.u32 %v2371_v9, %v1911_v10  ;;  %v792_v9 = vperm.slane %v3678_v6, 1 }
 0x14a   : > { %1486 = vmatpush.bf16.msrb.mxu2 %v2050_v17  ;;  %1512 = vmatpush.bf16.msra.mxu0 %v2054_v18  ;;  %v2466_v17 = vld [vmem:[%s3735_s5 + $0x340] sm:$0xf0]  ;;  %v1881_v18 = vld [vmem:[%s3735_s5 + $0x10] sm:$0xf] }
 0x14b   : > { %v1882_v25 = vor.u32 %v2367_v19, %v1881_v18 }
 0x14c   : > { %1501 = vmatpush.bf16.msrb.mxu3 %v2218_v23  ;;  %1527 = vmatpush.bf16.msra.mxu1 %v2222_v24  ;;  %v2417_v23 = vld [vmem:[%s3735_s5 + $0x1b8] sm:$0xf0]  ;;  %v2282_v24 = vor.u32 %v2466_v17, %v2281_v16 }
 0x14e   : > { %1487 = vmatpush.bf16.msrb.mxu2 %v2022_v29  ;;  %1513 = vmatpush.bf16.msra.mxu0 %v2026_v30  ;;  %v2086_v29 = vor.u32 %v2417_v23, %v2085_v22  ;;  %v2057_v30 = vld [vmem:[%s3735_s5 + $0x168] sm:$0xf] }
 0x14f   : > { %1454 = vmatmul.bf16.vlgmr.msra.gmra.mxu3 %v3384_v46  ;;  %1480 = vmatmul.bf16.vlgmr.msrb.gmra.mxu1 %v3384_v46 }
 0x150   : > { %1502 = vmatpush.bf16.msrb.mxu3 %v2190_v35  ;;  %1528 = vmatpush.bf16.msra.mxu1 %v2194_v36  ;;  %v2058_v35 = vor.u32 %v2410_v31, %v2057_v30  ;;  %v2029_v36 = vld [vmem:[%s3735_s5 + $0x130] sm:$0xf] }
 0x152   : > { %1488 = vmatpush.bf16.msrb.mxu2 %v1994_v41  ;;  %1514 = vmatpush.bf16.msra.mxu0 %v1998_v42  ;;  %v2030_v41 = vor.u32 %v2403_v37, %v2029_v36  ;;  %v2001_v42 = vld [vmem:[%s3735_s5 + $0xf8] sm:$0xf] }
 0x154   : > { %1503 = vmatpush.bf16.msrb.mxu3 %v2162_v48  ;;  %1529 = vmatpush.bf16.msra.mxu1 %v2166_v49  ;;  %v2002_v48 = vor.u32 %v2396_v43, %v2001_v42  ;;  %v1973_v49 = vld [vmem:[%s3735_s5 + $0xc0] sm:$0xf]  ;;  %v796_v43 = vperm.slane %v3678_v6, 5 }
 0x155   : > { %1441 = vmatmul.bf16.vlgmr.msra.gmra.mxu2 %v3424_v5  ;;  %1467 = vmatmul.bf16.vlgmr.msrb.gmra.mxu0 %v3424_v5 }
 0x156   : > { %1489 = vmatpush.bf16.msrb.mxu2 %v1966_v54  ;;  %1515 = vmatpush.bf16.msra.mxu0 %v1970_v55  ;;  %v1974_v54 = vor.u32 %v2389_v50, %v1973_v49  ;;  %v1945_v55 = vld [vmem:[%s3735_s5 + $0x88] sm:$0xf] }
 0x158   : > { %1504 = vmatpush.bf16.msrb.mxu3 %v2134_v60  ;;  %1530 = vmatpush.bf16.msra.mxu1 %v2138_v61  ;;  %v1946_v60 = vor.u32 %v2382_v56, %v1945_v55  ;;  %v1917_v61 = vld [vmem:[%s3735_s5 + $0x50] sm:$0xf] }
 0x159   : > { %v1918_v0 = vor.u32 %v2375_v62, %v1917_v61 }
 0x15a   : > { %1490 = vmatpush.bf16.msrb.mxu2 %v1938_v2  ;;  %1516 = vmatpush.bf16.msra.mxu0 %v1942_v3  ;;  %v2368_v2 = vld [vmem:[%s3735_s5 + $0x30] sm:$0xf0] }
 0x15b   : > { %v1890_v3 = vor.u32 %v2368_v2, %v1889_v1  ;;  %v797_v2 = vperm.slane %v3678_v6, 6 }
 0x15c   : > { %1505 = vmatpush.bf16.msrb.mxu3 %v2106_v11  ;;  %1531 = vmatpush.bf16.msra.mxu1 %v2110_v12  ;;  %v791_v11 = vperm.slane %v3678_v6, 0 }
 0x15e   : > { %1491 = vmatpush.bf16.msrb.mxu2 %v1910_v14  ;;  %1517 = vmatpush.bf16.msra.mxu0 %v1914_v15 }
 0x15f   : > { %1506 = vmatmul.bf16.vlgmr.msrb.gmra.mxu3 %v3384_v46  ;;  %1532 = vmatmul.bf16.vlgmr.msra.gmra.mxu1 %v3384_v46 }
 0x160   : > { %1550 = vmatpush.bf16.msra.mxu3 %v2310_v13 }
 0x162   : > { %1492 = vmatpush.bf16.msrb.mxu2 %v1882_v25  ;;  %1518 = vmatpush.bf16.msra.mxu0 %v1886_v26  ;;  %v793_v26 = vperm.slane %v3678_v6, 2 }
 0x164   : > { %1551 = vmatpush.bf16.msra.mxu3 %v2282_v24  ;;  %v794_v24 = vperm.slane %v3678_v6, 3 }
 0x165   : > { %1493 = vmatmul.bf16.vlgmr.msrb.gmra.mxu2 %v3424_v5  ;;  %1519 = vmatmul.bf16.vlgmr.msra.gmra.mxu0 %v3424_v5 }
 0x166   : > { %1537 = vmatpush.bf16.msra.mxu2 %v2086_v29 }
 0x168   : > { %1552 = vmatpush.bf16.msra.mxu3 %v2254_v32 }
 0x16a   : > { %1538 = vmatpush.bf16.msra.mxu2 %v2058_v35 }
 0x16c   : > { %1553 = vmatpush.bf16.msra.mxu3 %v2226_v38 }
 0x16e   : > { %1539 = vmatpush.bf16.msra.mxu2 %v2030_v41 }
 0x170   : > { %1554 = vmatpush.bf16.msra.mxu3 %v2198_v44 }
 0x172   : > { %1540 = vmatpush.bf16.msra.mxu2 %v2002_v48 }
 0x174   : > { %1555 = vmatpush.bf16.msra.mxu3 %v2170_v51 }
 0x176   : > { %1541 = vmatpush.bf16.msra.mxu2 %v1974_v54 }
 0x178   : > { %1556 = vmatpush.bf16.msra.mxu3 %v2142_v57 }
 0x17a   : > { %1542 = vmatpush.bf16.msra.mxu2 %v1946_v60 }
 0x17c   : > { %1557 = vmatpush.bf16.msra.mxu3 %v2114_v63 }
 0x17e   : > { %1543 = vmatpush.bf16.msra.mxu2 %v1918_v0 }
 0x17f   : > { %1558 = vmatmul.bf16.vlgmr.msra.gmra.mxu3 %v3384_v46 }
 0x182   : > { %1544 = vmatpush.bf16.msra.mxu2 %v1890_v3 }
 0x185   : > { %1545 = vmatmul.bf16.vlgmr.msra.gmra.mxu2 %v3424_v5 }
 0x1bc   : > { %v1429_v4 = vpop.f32.mrf.mxu1 }
 0x1c2   : > { %v1403_v7 = vpop.f32.mrf.mxu3  ;;  %v1416_v8 = vpop.f32.mrf.mxu0 }
 0x1c3   : > { %v1417_v12 = vadd.f32 %v1416_v8, %v792_v9 }
 0x1c4   : > { %v1431_v10 = vpop.f32.mrf.mxu1 }
 0x1c5   : > { %v1430_v15 = vadd.f32 %v1429_v4, %v1417_v12 }
 0x1c8   : > { %v1390_v13 = vpop.f32.mrf.mxu2 }
 0x1c9   : > { %v1391_v46 = vadd.f32 %v1390_v13, %v791_v11 }
 0x1ca   : > { %v1405_v14 = vpop.f32.mrf.mxu3  ;;  %v1418_v5 = vpop.f32.mrf.mxu0 }
 0x1cb   : > { %v1404_v16 = vadd.f32 %v1403_v7, %v1391_v46 }
 0x1cc   : > { %v1481_v17 = vpop.f32.mrf.mxu1 }
 0x1cd   : > { %v1563_v18 = vpack.c.bf16 %v1430_v15, %v1404_v16 }
 0x1cf   : > { %v1567_v19 = vunpack.c.l.bf16 %v1563_v18  ;;  %v1568_v20 = vunpack.c.h.bf16 %v1563_v18 }
 0x1d0   : > { %v1392_v21 = vpop.f32.mrf.mxu2 }
 0x1d1   : > { %2515 = vtanh.f32 %v1567_v19 }
 0x1d2   : > { %2517 = vtanh.f32 %v1568_v20  ;;  %v1455_v22 = vpop.f32.mrf.mxu3  ;;  %v1468_v23 = vpop.f32.mrf.mxu0 }
 0x1d3   : > { %v1469_v28 = vadd.f32 %v1468_v23, %v794_v24 }
 0x1d4   : > { %v1483_v25 = vpop.f32.mrf.mxu1 }
 0x1d5   : > { %v1482_v35 = vadd.f32 %v1481_v17, %v1469_v28 }
 0x1d7   : > { %v2516_v27 = vpop.eup %2515 }
 0x1d8   : > { %v2518_v29 = vpop.eup %2517  ;;  %v1442_v30 = vpop.f32.mrf.mxu2 }
 0x1d9   : > { %v1443_v31 = vadd.f32 %v1442_v30, %v793_v26  ;;  %v1581_v32 = vpack.c.bf16 %v2518_v29, %v2516_v27 }
 0x1da   : > { %v1457_v33 = vpop.f32.mrf.mxu3  ;;  %v1470_v34 = vpop.f32.mrf.mxu0 }
 0x1db   : > { %v1456_v36 = vadd.f32 %v1455_v22, %v1443_v31  ;;  %1585 = vst [vmem:[%s3687_s8] sm:$0xff] %v1581_v32 }
 0x1dc   : > { %v1533_v37 = vpop.f32.mrf.mxu1 }
 0x1dd   : > { %v1564_v38 = vpack.c.bf16 %v1482_v35, %v1456_v36 }
 0x1df   : > { %v1569_v39 = vunpack.c.l.bf16 %v1564_v38  ;;  %v1570_v40 = vunpack.c.h.bf16 %v1564_v38 }
 0x1e0   : > { %v1444_v41 = vpop.f32.mrf.mxu2 }
 0x1e1   : > { %2519 = vtanh.f32 %v1569_v39 }
 0x1e2   : > { %2521 = vtanh.f32 %v1570_v40  ;;  %v1507_v42 = vpop.f32.mrf.mxu3  ;;  %v1520_v44 = vpop.f32.mrf.mxu0 }
 0x1e3   : > { %v1521_v49 = vadd.f32 %v1520_v44, %v796_v43 }
 0x1e4   : > { %v1535_v45 = vpop.f32.mrf.mxu1 }
 0x1e5   : > { %v1534_v55 = vadd.f32 %v1533_v37, %v1521_v49 }
 0x1e7   : > { %v2520_v48 = vpop.eup %2519 }
 0x1e8   : > { %v2522_v50 = vpop.eup %2521  ;;  %v1494_v51 = vpop.f32.mrf.mxu2 }
 0x1e9   : > { %v1495_v52 = vadd.f32 %v1494_v51, %v795_v47  ;;  %v1582_v53 = vpack.c.bf16 %v2522_v50, %v2520_v48 }
 0x1ea   : > { %v1509_v54 = vpop.f32.mrf.mxu3  ;;  %v1522_v57 = vpop.f32.mrf.mxu0 }
 0x1eb   : > { %v1508_v56 = vadd.f32 %v1507_v42, %v1495_v52  ;;  %1586 = vst [vmem:[%s3687_s8 + $0x8] sm:$0xff] %v1582_v53 }
 0x1ed   : > { %v1565_v58 = vpack.c.bf16 %v1534_v55, %v1508_v56 }
 0x1ef   : > { %v1571_v59 = vunpack.c.l.bf16 %v1565_v58  ;;  %v1572_v60 = vunpack.c.h.bf16 %v1565_v58 }
 0x1f0   : > { %v1496_v61 = vpop.f32.mrf.mxu2 }
 0x1f1   : > { %2523 = vtanh.f32 %v1571_v59 }
 0x1f2   : > { %2525 = vtanh.f32 %v1572_v60 }
 0x1f7   : > { %v2524_v62 = vpop.eup %2523 }
 0x1f8   : > { %v2526_v63 = vpop.eup %2525 }
 0x1f9   : > { %v1583_v0 = vpack.c.bf16 %v2526_v63, %v2524_v62 }
 0x1fb   : > { %1587 = vst [vmem:[%s3687_s8 + $0x10] sm:$0xff] %v1583_v0 }
 0x202   : > { %v1559_v1 = vpop.f32.mrf.mxu3 }
 0x208   : > { %v1546_v3 = vpop.f32.mrf.mxu2 }
 0x209   : > { %v1547_v4 = vadd.f32 %v1546_v3, %v797_v2 }
 0x20a   : > { %v1561_v7 = vpop.f32.mrf.mxu3 }
 0x20b   : > { %v1560_v8 = vadd.f32 %v1559_v1, %v1547_v4 }
 0x20d   : > { %v1566_v9 = vpack.c.bf16 %v1560_v8, %v1560_v8 }
 0x20f   : > { %v1573_v10 = vunpack.c.l.bf16 %v1566_v9 }
 0x210   : > { %v1548_v11 = vpop.f32.mrf.mxu2 }
 0x211   : > { %2527 = vtanh.f32 %v1573_v10 }
 0x217   : > { %v2528_v12 = vpop.eup %2527 }
 0x218   : > { %v1584_v6 = vpack.c.bf16 %v2528_v12, %v2528_v12 }
 0x21a   : > { %1589 = vst.msk [vmem:[%s3687_s8 + $0x18] sm:$0xf] %vm1588_vm0, %v1584_v6 }
 0x21b   : > { %2556 = shalt.err (!%p2553_p3)
}
 0x21c   : > { %2476 = dma.vmem_to_hbm [thread:$0]  (%p2671_p5), %s1605_s16, 448, %s1607_s15, %s1591_s17  }
 0x21d PF: > { %p2482_p4 = scmp.ge.s32.totalorder %s2591_s27, 2  ;;  %s1618_s22 = sand.u32 1, %s2579_s24  }
 0x21e   : > { %s1619_s8 = scalar_lea.sflag [#allocation3], %s1618_s22 }
 0x21f   : > { %p2479_p7 = pnand %p2482_p4, %p2675_p6 }
 0x221   : > { %p2480_p8 = pneg %p2479_p7 }
 0x223   : > { %2574 = dma.done.wait (%p2480_p8), %s1619_s8, 448  }
 0x224   : > { %2576 = vsyncadd (%p2480_p8), %s1619_s8, 4294966848  ;;  %p17_p9 = scmp.ge.s32.totalorder %s2658_s30, 4   ;;  %s3740_s24 = smov %s2583_s25 }
 0x225   : > { %s3741_s25 = smov %s2587_s26  ;;  %s3742_s26 = smov %s2669_s10 }
 0x226   : > { %s3743_s27 = smov %s2658_s30  ;;  %19 = sbr.rel (!%p17_p9) target bundleno = 3 (0x3), region = 83 }
 0x22b   :  { %1625 = vsyncpa [#allocation3], 1 }
 0x22c   :  { %1627 = vsyncpa [#allocation3 + $0x1], 1 }

</bundles_post_ra>
